<compile_context>
chip_gen: v7x
topology: tpu7x:2x2x1
jax: 0.10.0
libtpu: 0.0.40
codegen_flags: <defaults>
</compile_context>

<pallas_src>
import functools

import jax
import jax.numpy as jnp
from jax.experimental import pallas as pl
from jax.experimental.pallas import tpu as pltpu


def _round_up(v, m):
    return (v + m - 1) // m * m


def _equalized_linear_kernel(scale_ref, x_ref, w_t_ref, b_ref, o_ref, acc_ref):
    # scale_ref: SMEM (1,1) f32 scalar
    # x_ref:     VMEM (tm, tk)
    # w_t_ref:   VMEM (tk, tn)   (pre-transposed weight)
    # b_ref:     VMEM (1, tn)    f32 bias
    # o_ref:     VMEM (tm, tn)
    # acc_ref:   VMEM (tm, tn)   f32 accumulator scratch
    k = pl.program_id(2)

    @pl.when(k == 0)
    def _init():
        acc_ref[...] = jnp.zeros_like(acc_ref)

    acc_ref[...] += jnp.dot(x_ref[...], w_t_ref[...],
                            preferred_element_type=jnp.float32)

    @pl.when(k == pl.num_programs(2) - 1)
    def _finalize():
        scale = scale_ref[0, 0]
        y = acc_ref[...] * scale + b_ref[...].astype(jnp.float32)
        o_ref[...] = y.astype(o_ref.dtype)


def equalized_linear(x, w_t, bias, scale, *, tm=None, tn=None, tk=None,
                     compute_dtype=None):
    """Equalized linear forward.

    x:     (B, ch_in)
    w_t:   (ch_in, ch_out)   pre-transposed, pre-normalized weight (W.T)
    bias:  (ch_out,)         f32
    scale: scalar            f32
    compute_dtype: optional dtype (e.g. jnp.bfloat16) for the matmul operands;
                   accumulation stays f32, bias/scale applied in f32.
    """
    B, ch_in = x.shape
    k_dim, ch_out = w_t.shape
    assert k_dim == ch_in, (w_t.shape, x.shape)

    # Tile selection: lane dimensions (N, K) as 128-multiples (cap 512),
    # sublane dimension (M) as an 8-multiple (cap 256).
    if tm is None:
        tm = min(256, _round_up(B, 8))
    if tk is None:
        tk = min(512, _round_up(ch_in, 128))
    if tn is None:
        tn = min(512, _round_up(ch_out, 128))

    m_pad = _round_up(B, tm)
    k_pad = _round_up(ch_in, tk)
    n_pad = _round_up(ch_out, tn)

    x_p = x
    if m_pad != B or k_pad != ch_in:
        x_p = jnp.pad(x, ((0, m_pad - B), (0, k_pad - ch_in)))
    w_p = w_t
    if k_pad != ch_in or n_pad != ch_out:
        w_p = jnp.pad(w_t, ((0, k_pad - ch_in), (0, n_pad - ch_out)))
    b_p = bias.reshape(1, ch_out).astype(jnp.float32)
    if n_pad != ch_out:
        b_p = jnp.pad(b_p, ((0, 0), (0, n_pad - ch_out)))

    if compute_dtype is not None:
        x_p = x_p.astype(compute_dtype)
        w_p = w_p.astype(compute_dtype)

    scale_arr = jnp.asarray(scale, jnp.float32).reshape(1, 1)

    grid = (m_pad // tm, n_pad // tn, k_pad // tk)

    flops = 2 * m_pad * n_pad * k_pad
    bytes_accessed = (x_p.size * x_p.dtype.itemsize
                      + w_p.size * w_p.dtype.itemsize
                      + b_p.size * 4
                      + m_pad * n_pad * jnp.dtype(x.dtype).itemsize)

    out = pl.pallas_call(
        _equalized_linear_kernel,
        out_shape=jax.ShapeDtypeStruct((m_pad, n_pad), x.dtype),
        grid=grid,
        in_specs=[
            pl.BlockSpec(memory_space=pltpu.SMEM),             # scale scalar
            pl.BlockSpec((tm, tk), lambda i, j, k: (i, k)),    # x
            pl.BlockSpec((tk, tn), lambda i, j, k: (k, j)),    # W.T
            pl.BlockSpec((1, tn), lambda i, j, k: (0, j)),     # bias
        ],
        out_specs=pl.BlockSpec((tm, tn), lambda i, j, k: (i, j)),
        scratch_shapes=[pltpu.VMEM((tm, tn), jnp.float32)],
        compiler_params=pltpu.CompilerParams(
            dimension_semantics=("parallel", "parallel", "arbitrary")),
        cost_estimate=pl.CostEstimate(flops=flops, transcendentals=0,
                                      bytes_accessed=int(bytes_accessed)),
    )(scale_arr, x_p, w_p, b_p)

    if m_pad != B or n_pad != ch_out:
        out = out[:B, :ch_out]
    return out


def init_equalized_linear_params(key, ch_in, ch_out):
    """Mirror of EqualizedLinear.__init__ (deterministic, synthetic).

    Returns the weight ALREADY transposed to (ch_in, ch_out) so no per-forward
    transpose (and no extra HBM copy) is needed.
    """
    # kaiming_normal_ with gain('linear') == 1: std = 1 / sqrt(fan_in), fan_in = ch_in.
    w_init = jax.random.normal(key, (ch_out, ch_in), jnp.float32) / jnp.sqrt(
        jnp.asarray(ch_in, jnp.float32))
    scale = jnp.sqrt(jnp.mean(w_init ** 2))
    w = w_init / scale
    w_t = jnp.transpose(w)                       # done ONCE at init: (ch_in, ch_out)
    bias = jnp.zeros((ch_out,), jnp.float32)
    return w_t, bias, scale


if __name__ == "__main__":
    key = jax.random.PRNGKey(0)
    k_w, k_x, k_w2, k_x2 = jax.random.split(key, 4)

    # --- Small shape consistent with the module (toy PGGAN head) ---------------
    batch, ch_in, ch_out = 8, 32, 32
    w_t, bias, scale = init_equalized_linear_params(k_w, ch_in, ch_out)
    x = jax.random.normal(k_x, (batch, ch_in), jnp.float32)

    fwd = jax.jit(equalized_linear)
    out = jax.block_until_ready(fwd(x, w_t, bias, scale))

    ref = (x * scale) @ w_t + bias.reshape(1, -1)
    assert out.shape == (batch, ch_out)
    assert jnp.allclose(out, ref, atol=1e-5, rtol=1e-5), "small-shape mismatch"

    # --- Larger shape exercising the tiled (M, N, K) grid and K-accumulation ---
    b2, ci2, co2 = 48, 256, 192
    w_t2, bias2, scale2 = init_equalized_linear_params(k_w2, ci2, co2)
    x2 = jax.random.normal(k_x2, (b2, ci2), jnp.float32)

    fwd2 = jax.jit(functools.partial(equalized_linear, tm=16, tn=128, tk=128))
    out2 = jax.block_until_ready(fwd2(x2, w_t2, bias2, scale2))

    ref2 = jnp.dot(x2 * scale2, w_t2,
                   precision=jax.lax.Precision.HIGHEST) + bias2.reshape(1, -1)
    assert out2.shape == (b2, co2)
    assert jnp.allclose(out2, ref2, atol=1e-3, rtol=1e-3), "tiled-shape mismatch"

    print("KERNEL_OK")
</pallas_src>

<mosaic_0001>
module attributes {stable_mosaic.version = 11 : i64} {
  func.func @_equalized_linear_kernel(%arg0: i32, %arg1: i32, %arg2: i32, %arg3: memref<1x1xf32, #tpu.memory_space<smem>>, %arg4: memref<8x128xf32, #tpu.memory_space<vmem>>, %arg5: memref<128x128xf32, #tpu.memory_space<vmem>>, %arg6: memref<1x128xf32, #tpu.memory_space<vmem>>, %arg7: memref<8x128xf32, #tpu.memory_space<vmem>>, %arg8: memref<8x128xf32, #tpu.memory_space<vmem>>) attributes {dimension_semantics = [#tpu.dimension_semantics<parallel>, #tpu.dimension_semantics<parallel>, #tpu.dimension_semantics<arbitrary>], iteration_bounds = array<i64: 1, 1, 1>, scalar_prefetch = 0 : i64, scratch_operands = 1 : i64, tpu.core_type = #tpu.core_type<tc>, window_params = [{transform_indices = @transform_0, window_bounds = array<i64: 1, 1>}, {transform_indices = @transform_1, window_bounds = array<i64: 8, 128>}, {transform_indices = @transform_2, window_bounds = array<i64: 128, 128>}, {transform_indices = @transform_3, window_bounds = array<i64: 1, 128>}, {transform_indices = @transform_4, window_bounds = array<i64: 8, 128>}]} {
    %c0_i32 = arith.constant 0 : i32
    %0 = arith.cmpi eq, %arg2, %c0_i32 : i32
    %1 = arith.extui %0 : i1 to i32
    %c0_i32_0 = arith.constant 0 : i32
    %2 = arith.cmpi ne, %1, %c0_i32_0 : i32
    scf.if %2 {
      %cst_10 = arith.constant 0.000000e+00 : f32
      %12 = vector.broadcast %cst_10 : f32 to vector<8x128xf32>
      %c0_11 = arith.constant 0 : index
      %c0_12 = arith.constant 0 : index
      %13 = vector.load %arg8[%c0_11, %c0_12] : memref<8x128xf32, #tpu.memory_space<vmem>>, vector<8x128xf32>
      tpu.vector_store %arg8[%c0_11, %c0_12], %12 {strides = array<i32>} : memref<8x128xf32, #tpu.memory_space<vmem>>, vector<8x128xf32>,
    } else {
    }
    %c0 = arith.constant 0 : index
    %c0_1 = arith.constant 0 : index
    %3 = vector.load %arg8[%c0, %c0_1] : memref<8x128xf32, #tpu.memory_space<vmem>>, vector<8x128xf32>
    %c0_2 = arith.constant 0 : index
    %c0_3 = arith.constant 0 : index
    %4 = vector.load %arg4[%c0_2, %c0_3] : memref<8x128xf32, #tpu.memory_space<vmem>>, vector<8x128xf32>
    %c0_4 = arith.constant 0 : index
    %c0_5 = arith.constant 0 : index
    %5 = vector.load %arg5[%c0_4, %c0_5] : memref<128x128xf32, #tpu.memory_space<vmem>>, vector<128x128xf32>
    %cst = arith.constant dense<0.000000e+00> : vector<8x128xf32>
    %6 = tpu.matmul %4, %5, %cst {dimension_numbers = #tpu.dot_dimension_numbers<[1], [0], [0], [1], [0, 0, 1, 1], [], []>} : vector<8x128xf32>, vector<128x128xf32>, vector<8x128xf32> -> vector<8x128xf32>
    %7 = arith.addf %3, %6 : vector<8x128xf32>
    %c0_6 = arith.constant 0 : index
    %c0_7 = arith.constant 0 : index
    %8 = vector.load %arg8[%c0_6, %c0_7] : memref<8x128xf32, #tpu.memory_space<vmem>>, vector<8x128xf32>
    tpu.vector_store %arg8[%c0_6, %c0_7], %7 {strides = array<i32>} : memref<8x128xf32, #tpu.memory_space<vmem>>, vector<8x128xf32>,
    %c0_i32_8 = arith.constant 0 : i32
    %9 = arith.cmpi eq, %arg2, %c0_i32_8 : i32
    %10 = arith.extui %9 : i1 to i32
    %c0_i32_9 = arith.constant 0 : i32
    %11 = arith.cmpi ne, %10, %c0_i32_9 : i32
    scf.if %11 {
      %c0_10 = arith.constant 0 : index
      %c0_11 = arith.constant 0 : index
      %12 = memref.load %arg3[%c0_10, %c0_11] : memref<1x1xf32, #tpu.memory_space<smem>>
      %c0_12 = arith.constant 0 : index
      %c0_13 = arith.constant 0 : index
      %13 = vector.load %arg8[%c0_12, %c0_13] : memref<8x128xf32, #tpu.memory_space<vmem>>, vector<8x128xf32>
      %14 = vector.broadcast %12 : f32 to vector<8x128xf32>
      %15 = arith.mulf %13, %14 : vector<8x128xf32>
      %c0_14 = arith.constant 0 : index
      %c0_15 = arith.constant 0 : index
      %16 = vector.load %arg6[%c0_14, %c0_15] : memref<1x128xf32, #tpu.memory_space<vmem>>, vector<1x128xf32>
      %17 = vector.broadcast %16 : vector<1x128xf32> to vector<8x128xf32>
      %18 = arith.addf %15, %17 : vector<8x128xf32>
      %c0_16 = arith.constant 0 : index
      %c0_17 = arith.constant 0 : index
      %19 = vector.load %arg7[%c0_16, %c0_17] : memref<8x128xf32, #tpu.memory_space<vmem>>, vector<8x128xf32>
      tpu.vector_store %arg7[%c0_16, %c0_17], %18 {strides = array<i32>} : memref<8x128xf32, #tpu.memory_space<vmem>>, vector<8x128xf32>,
    } else {
    }
    return
  }
  func.func @transform_0(%arg0: i32, %arg1: i32, %arg2: i32) -> (i32, i32) {
    %c0_i32 = arith.constant 0 : i32
    %c0_i32_0 = arith.constant 0 : i32
    %c0_i32_1 = arith.constant 0 : i32
    return %c0_i32, %c0_i32_0 : i32, i32
  }
  func.func @transform_1(%arg0: i32, %arg1: i32, %arg2: i32) -> (i32, i32) {
    %c0_i32 = arith.constant 0 : i32
    return %arg0, %arg2 : i32, i32
  }
  func.func @transform_2(%arg0: i32, %arg1: i32, %arg2: i32) -> (i32, i32) {
    %c0_i32 = arith.constant 0 : i32
    return %arg2, %arg1 : i32, i32
  }
  func.func @transform_3(%arg0: i32, %arg1: i32, %arg2: i32) -> (i32, i32) {
    %c0_i32 = arith.constant 0 : i32
    %c0_i32_0 = arith.constant 0 : i32
    return %c0_i32, %arg1 : i32, i32
  }
  func.func @transform_4(%arg0: i32, %arg1: i32, %arg2: i32) -> (i32, i32) {
    %c0_i32 = arith.constant 0 : i32
    return %arg0, %arg1 : i32, i32
  }
}

</mosaic_0001>

<bundles_post_ra>
// kernel: equalized_linear.1
= control target key start
LH: loop header
LB: loop body
LE: loop exit
PB: predicated region body
PF: predicated region fallthrough
CT: control target
= control target key end

     0   :  { %v249_v3 = vmov 0.0|0.0   ;;  %vm250_vm0 = vmmov 0   ;;  %v251_v6 = vmov 0.0   ;;  %s347_s0 = inlined_call_operand.<no memory space> [shape: f32[1,1], index: 0, kind: input, shape index: {}]   ;;  %s348_s1 = inlined_call_operand.vmem [shape: f32[8,128], index: 1, kind: input, shape index: {}]   ;;  %s349_s2 = inlined_call_operand.vmem [shape: f32[128,128], index: 2, kind: input, shape index: {}]   ;;  %s350_s3 = inlined_call_operand.vmem [shape: f32[1,128], index: 3, kind: input, shape index: {}]   ;;  %s351_s4 = inlined_call_operand.hbm [shape: f32[8,128], index: 4, kind: output, shape index: {}]  }
   0x1   :  { %v26_v0 = vld [vmem:[%s349_s2] sm:$0xff]  ;;  %v27_v1 = vld [vmem:[%s349_s2 + $0x8] sm:$0xff]  ;;  %v28_v2 = vld [vmem:[%s349_s2 + $0x10] sm:$0xff]  ;;  %197 = vmatprep.subr.bf16.mxu0 %v249_v3  ;;  %194 = vmatprep.mubr.msk.f32.mxu0 %vm250_vm0, %v251_v6 }
   0x2   :  { %v198_v4 = vpack.c.bf16 %v27_v1, %v26_v0  ;;  %v29_v5 = vld [vmem:[%s349_s2 + $0x18] sm:$0xff]  ;;  %v30_v8 = vld [vmem:[%s349_s2 + $0x20] sm:$0xff]  ;;  %v31_v9 = vld [vmem:[%s349_s2 + $0x28] sm:$0xff] }
   0x3   :  { %v201_v7 = vpack.c.bf16 %v29_v5, %v28_v2 }
   0x4   :  { %199 = vmatpush3.bf16.msra.mxu0 %v198_v4 }
   0x5   :  { %200 = vmatprep.subr.bf16.mxu0 %v249_v3 }
   0x6   :  { %10 = vsyncpa [#allocation5], 0  ;;  %v204_v10 = vpack.c.bf16 %v31_v9, %v30_v8  ;;  %v32_v11 = vld [vmem:[%s349_s2 + $0x30] sm:$0xff]  ;;  %v33_v12 = vld [vmem:[%s349_s2 + $0x38] sm:$0xff]  ;;  %v119_v27 = vstv %s347_s0  ;;  %s252_s27 = smov [#allocation4]  }
   0x7   :  { %v207_v13 = vpack.c.bf16 %v33_v12, %v32_v11  ;;  %v34_v14 = vld [vmem:[%s349_s2 + $0x40] sm:$0xff]  ;;  %v35_v15 = vld [vmem:[%s349_s2 + $0x48] sm:$0xff]  ;;  %v36_v17 = vld [vmem:[%s349_s2 + $0x50] sm:$0xff] }
   0x8   :  { %202 = vmatpush3.bf16.msra.mxu0 %v201_v7  ;;  %v210_v16 = vpack.c.bf16 %v35_v15, %v34_v14  ;;  %v37_v18 = vld [vmem:[%s349_s2 + $0x58] sm:$0xff]  ;;  %v38_v20 = vld [vmem:[%s349_s2 + $0x60] sm:$0xff]  ;;  %v39_v21 = vld [vmem:[%s349_s2 + $0x68] sm:$0xff] }
   0x9   :  { %203 = vmatprep.subr.bf16.mxu0 %v249_v3  ;;  %v213_v19 = vpack.c.bf16 %v37_v18, %v36_v17  ;;  %v216_v22 = vpack.c.bf16 %v39_v21, %v38_v20  ;;  %v40_v23 = vld [vmem:[%s349_s2 + $0x70] sm:$0xff]  ;;  %v41_v24 = vld [vmem:[%s349_s2 + $0x78] sm:$0xff]  ;;  %v25_v26 = vld [vmem:[%s348_s1] sm:$0xff]  ;;  %s136_s2 = sshll.u32 %s252_s27, 4  ;;  %s137_s2 = int_to_ptr.vmem [resolvable:$true] %s136_s2 }
   0xa   :  { %v219_v25 = vpack.c.bf16 %v41_v24, %v40_v23  ;;  %v144_v29 = vld [vmem:[%s350_s3] ss:$0 sm:$0xff]  ;;  %s225_s28 = scalar_lea.vmem %s137_s2, 128  ;;  %p230_p1 = scmp.lt.s32.totalorder %s137_s2, %s137_s2 }
   0xb   :  { %p226_p0 = scmp.ne.s32.totalorder %s137_s2, %s225_s28  ;;  %p231_p2 = scmp.lt.s32.totalorder %s225_s28, %s225_s28 }
   0xc   :  { %205 = vmatpush3.bf16.msra.mxu0 %v204_v10 }
   0xd   :  { %206 = vmatprep.subr.bf16.mxu0 %v249_v3  ;;  %p232_p3 = por %p231_p2, %p230_p1 }
   0xf   :  { %p233_p4 = pnand %p232_p3, %p226_p0 }
  0x10   :  { %208 = vmatpush3.bf16.msra.mxu0 %v207_v13 }
  0x11   :  { %209 = vmatprep.subr.bf16.mxu0 %v249_v3 }
  0x14   :  { %211 = vmatpush3.bf16.msra.mxu0 %v210_v16 }
  0x15   :  { %212 = vmatprep.subr.bf16.mxu0 %v249_v3 }
  0x18   :  { %214 = vmatpush3.bf16.msra.mxu0 %v213_v19 }
  0x19   :  { %215 = vmatprep.subr.bf16.mxu0 %v249_v3 }
  0x1c   :  { %217 = vmatpush3.bf16.msra.mxu0 %v216_v22 }
  0x1d   :  { %218 = vmatprep.subr.bf16.mxu0 %v249_v3 }
  0x20   :  { %220 = vmatpush3.bf16.msra.mxu0 %v219_v25 }
  0x23   :  { %195 = vmatmul.mubr.f32.vlgmr.msra.gmra.mrb[0].mxu0 %v25_v26 }
  0xf6   :  { %v108_v28 = vpop.f32.mrb[0].mxu0 }
  0xf7   :  { %v120_v30 = vmul.f32 %v119_v27, %v108_v28  ;;  %v196_v31 = vpop.f32.mrb[1].mxu0 }
  0xf9   :  { %v128_v32 = vadd.f32 %v144_v29, %v120_v30 }
  0xfb   :  { %129 = vst [vmem:[#allocation4] sm:$0xff] %v128_v32 }
  0xfc   :  { %236 = shalt.err (!%p233_p4)
}
  0xfd   :  { %s237_s29 = scalar_lea.hbm %s351_s4, 128 }
  0xfe   :  { %p238_p5 = scmp.ne.s32.totalorder %s351_s4, %s237_s29  ;;  %p241_p6 = scmp.lt.u32.totalorder %s237_s29, %s351_s4 }
 0x100   :  { %p243_p7 = pnand %p241_p6, %p238_p5 }
 0x102   :  { %246 = shalt.err (!%p243_p7)
}
 0x103   :  { %139 = dma.vmem_to_hbm [thread:$0]  %s137_s2, 128, %s351_s4, [#allocation5]  }
 0x104   :  { %247 = dma.done.wait [#allocation5], 128  }
 0x105   :  { %248 = vsyncadd [#allocation5], 4294967168 }
 0x106   :  { %143 = vsyncpa [#allocation5], 1 }

</bundles_post_ra>
